<compile_context>
chip_gen: v5e
topology: v5e:2x2
jax: 0.10.0
libtpu: 0.0.40
codegen_flags: <defaults>
</compile_context>

<pallas_src>
from functools import partial

import jax
import jax.numpy as jnp
from jax.experimental import pallas as pl
from jax.experimental.pallas import tpu as pltpu


def _round_up(v, m):
    return ((v + m - 1) // m) * m


def _pick_tile(target, total):
    """Largest multiple of 128 that is <= target and divides `total`.
    `total` is a multiple of 128, so the loop always terminates (>=128)."""
    t = max(128, min(target, total))
    t = (t // 128) * 128
    while total % t:
        t -= 128
    return t


def gcn_agg_kernel(adj_ref, xw_ref, dinv_ref, b_ref, o_ref, acc_ref):
    # adj_ref : (TM, TK) bf16  raw adjacency tile (with self loops), streamed
    # xw_ref  : (TK, 1)  bf16  (D^-1/2 * (x @ W^T)) k-slice
    # dinv_ref: (TM, 1)  f32   row scale D^-1/2, resident per row tile
    # b_ref   : (1,)     f32   GCNConv bias, SMEM
    # o_ref   : (TM, 1)  f32   output row tile (written on last k step)
    # acc_ref : (TM, 1)  f32   VMEM accumulator scratch
    k = pl.program_id(1)

    @pl.when(k == 0)
    def _():
        acc_ref[...] = jnp.zeros_like(acc_ref)

    acc_ref[...] += jnp.dot(adj_ref[...], xw_ref[...],
                            preferred_element_type=jnp.float32)

    @pl.when(k == pl.num_programs(1) - 1)
    def _():
        out = acc_ref[...] * dinv_ref[...] + b_ref[0]
        o_ref[...] = jnp.maximum(out, 0.0).astype(o_ref.dtype)


@partial(jax.jit, static_argnames=("tile_rows", "tile_cols"))
def one_layer_gcn_forward(x, edge_index, weight, bias, *,
                          tile_rows=512, tile_cols=2048):
    """x: (N, D) f32, edge_index: (2, E) int32, weight: (1, D), bias: (1,)."""
    n, _ = x.shape
    src = edge_index[0]
    dst = edge_index[1]

    np_ = _round_up(n, 128)

    # ---- O(E)/O(N) graph statistics (no extra dense N^2 passes) ----
    in_deg = jnp.zeros((np_,), jnp.float32).at[dst].add(
        jnp.ones(src.shape, jnp.float32))
    self_cnt = jnp.zeros((np_,), jnp.float32).at[dst].add(
        jnp.where(src == dst, 1.0, 0.0))
    is_real = jnp.arange(np_) < n
    needs_loop = (self_cnt == 0) & is_real                  # add_remaining_self_loops
    deg = in_deg + needs_loop.astype(jnp.float32)           # in-degree incl. loop
    dinv = jnp.where(deg > 0, 1.0 / jnp.sqrt(deg), 0.0)     # D^-1/2 (0 on pad rows)

    # ---- raw adjacency, built directly at padded size in the streaming dtype ----
    # A[i, j] = #edges j -> i (aggregation at the target node), plus self loops.
    adj = jnp.zeros((np_, np_), jnp.bfloat16).at[dst, src].add(
        jnp.ones(src.shape, jnp.bfloat16))
    diag = jnp.arange(np_)
    adj = adj.at[diag, diag].add(needs_loop.astype(jnp.bfloat16))

    # ---- tiny matvec x @ W^T, pre-scaled by the column normalization D^-1/2 ----
    xw = jnp.dot(x.astype(jnp.float32), weight.astype(jnp.float32).T)   # (n, 1)
    xw_scaled = xw[:, 0] * dinv[:n]
    xw_p = jnp.zeros((np_, 1), jnp.bfloat16).at[:n, 0].set(
        xw_scaled.astype(jnp.bfloat16))

    dinv_col = dinv.reshape(np_, 1).astype(jnp.float32)
    b = bias.reshape(1).astype(jnp.float32)

    # ---- tiling: reduction (column) dimension tiled too -> bounded VMEM ----
    row_target = tile_rows
    if np_ >= 4 * 128:  # keep >= 4 row tiles so megacore can shard the row axis
        row_target = min(row_target, max(128, (np_ // 4) // 128 * 128))
    tm = _pick_tile(row_target, np_)
    tk = _pick_tile(tile_cols, np_)
    grid = (np_ // tm, np_ // tk)

    # VMEM budget: double-buffered adj tile dominates; (x, 1) blocks are
    # lane-padded to 128.  Cap at 40 MiB (well inside v7x's 64 MiB per TC).
    footprint = (2 * tm * tk * 2          # adj bf16, double buffered
                 + 2 * tk * 128 * 2       # xw slice (lane padded)
                 + 2 * tm * 128 * 4 * 2   # dinv + out blocks
                 + tm * 128 * 4)          # f32 accumulator scratch
    vmem_limit = int(min(40 * 1024 * 1024,
                         max(2 * footprint, 16 * 1024 * 1024)))

    cost = pl.CostEstimate(
        flops=2 * np_ * np_,
        transcendentals=0,
        bytes_accessed=np_ * np_ * 2 + (np_ // tm) * np_ * 2 + np_ * 8,
    )

    out_p = pl.pallas_call(
        gcn_agg_kernel,
        out_shape=jax.ShapeDtypeStruct((np_, 1), jnp.float32),
        grid=grid,
        in_specs=[
            # adjacency tile: the dominant HBM stream, pipelined by BlockSpec
            pl.BlockSpec((tm, tk), lambda i, k: (i, k)),
            # xw k-slice
            pl.BlockSpec((tk, 1), lambda i, k: (k, 0)),
            # per-row D^-1/2 (resident across the k loop)
            pl.BlockSpec((tm, 1), lambda i, k: (i, 0)),
            # bias scalar in SMEM
            pl.BlockSpec(memory_space=pltpu.MemorySpace.SMEM),
        ],
        out_specs=pl.BlockSpec((tm, 1), lambda i, k: (i, 0)),
        scratch_shapes=[pltpu.VMEM((tm, 1), jnp.float32)],
        compiler_params=pltpu.CompilerParams(
            dimension_semantics=("parallel", "arbitrary"),
            vmem_limit_bytes=vmem_limit,
        ),
        cost_estimate=cost,
    )(adj, xw_p, dinv_col, b)

    return out_p[:n]


if __name__ == "__main__":
    key = jax.random.PRNGKey(0)
    k_x, k_e, k_w = jax.random.split(key, 3)

    N = 384           # num nodes
    D = 32            # embedding_dim
    E = 1024          # num edges

    x = jax.random.normal(k_x, (N, D), dtype=jnp.float32)
    edge_index = jax.random.randint(k_e, (2, E), 0, N, dtype=jnp.int32)

    # GCNConv parameter shapes: lin.weight (1, D), bias (1,)
    limit = (6.0 / (D + 1)) ** 0.5
    weight = jax.random.uniform(k_w, (1, D), minval=-limit, maxval=limit,
                                dtype=jnp.float32)
    bias = jnp.array([0.1], dtype=jnp.float32)

    # small tiles so the demo exercises a multi-step (3 x 3) pipelined grid
    out = one_layer_gcn_forward(x, edge_index, weight, bias,
                                tile_rows=128, tile_cols=128)
    out = jax.block_until_ready(out)
    assert out.shape == (N, 1)

    # ---- references (PyG GCNConv semantics) ----
    src, dst = edge_index[0], edge_index[1]
    A = jnp.zeros((N, N), jnp.float32).at[dst, src].add(1.0)
    d0 = jnp.diagonal(A)
    A = A + jnp.diag(jnp.where(d0 > 0, 0.0, 1.0))           # remaining self loops
    deg = A.sum(axis=1)
    dinv = jnp.where(deg > 0, 1.0 / jnp.sqrt(deg), 0.0)
    xw = x @ weight.T
    ref_f32 = jnp.maximum(dinv[:, None] * (A @ (dinv[:, None] * xw)) + bias, 0.0)
    # reference matching the kernel's bf16 streaming of (D^-1/2 * xw)
    xw_q = (dinv[:, None] * xw).astype(jnp.bfloat16).astype(jnp.float32)
    ref_q = jnp.maximum(dinv[:, None] * (A @ xw_q) + bias, 0.0)

    assert jnp.allclose(out, ref_q, atol=1e-3, rtol=1e-3)
    assert jnp.allclose(out, ref_f32, atol=1e-1, rtol=1e-1)

    print("KERNEL_OK")
</pallas_src>

<mosaic_0001>
module attributes {stable_mosaic.version = 11 : i64} {
  func.func @gcn_agg_kernel(%arg0: i32, %arg1: i32, %arg2: memref<128x128xbf16, #tpu.memory_space<vmem>>, %arg3: memref<128x1xbf16, #tpu.memory_space<vmem>>, %arg4: memref<128x1xf32, #tpu.memory_space<vmem>>, %arg5: memref<1xf32, #tpu.memory_space<smem>>, %arg6: memref<128x1xf32, #tpu.memory_space<vmem>>, %arg7: memref<128x1xf32, #tpu.memory_space<vmem>>) attributes {dimension_semantics = [#tpu.dimension_semantics<parallel>, #tpu.dimension_semantics<arbitrary>], iteration_bounds = array<i64: 3, 3>, scalar_prefetch = 0 : i64, scratch_operands = 1 : i64, tpu.core_type = #tpu.core_type<tc>, window_params = [{transform_indices = @transform_0, window_bounds = array<i64: 128, 128>}, {transform_indices = @transform_1, window_bounds = array<i64: 128, 1>}, {transform_indices = @transform_2, window_bounds = array<i64: 128, 1>}, {transform_indices = @transform_3, window_bounds = array<i64: 1>}, {transform_indices = @transform_4, window_bounds = array<i64: 128, 1>}]} {
    %c0_i32 = arith.constant 0 : i32
    %0 = arith.cmpi eq, %arg1, %c0_i32 : i32
    %1 = arith.extui %0 : i1 to i32
    %c0_i32_0 = arith.constant 0 : i32
    %2 = arith.cmpi ne, %1, %c0_i32_0 : i32
    scf.if %2 {
      %cst_9 = arith.constant 0.000000e+00 : f32
      %12 = vector.broadcast %cst_9 : f32 to vector<128x1xf32>
      %c0_10 = arith.constant 0 : index
      %c0_11 = arith.constant 0 : index
      %13 = vector.load %arg7[%c0_10, %c0_11] : memref<128x1xf32, #tpu.memory_space<vmem>>, vector<128x1xf32>
      tpu.vector_store %arg7[%c0_10, %c0_11], %12 {strides = array<i32>} : memref<128x1xf32, #tpu.memory_space<vmem>>, vector<128x1xf32>,
    } else {
    }
    %c0 = arith.constant 0 : index
    %c0_1 = arith.constant 0 : index
    %3 = vector.load %arg7[%c0, %c0_1] : memref<128x1xf32, #tpu.memory_space<vmem>>, vector<128x1xf32>
    %c0_2 = arith.constant 0 : index
    %c0_3 = arith.constant 0 : index
    %4 = vector.load %arg2[%c0_2, %c0_3] : memref<128x128xbf16, #tpu.memory_space<vmem>>, vector<128x128xbf16>
    %c0_4 = arith.constant 0 : index
    %c0_5 = arith.constant 0 : index
    %5 = vector.load %arg3[%c0_4, %c0_5] : memref<128x1xbf16, #tpu.memory_space<vmem>>, vector<128x1xbf16>
    %cst = arith.constant dense<0.000000e+00> : vector<128x1xf32>
    %6 = tpu.matmul %4, %5, %cst {dimension_numbers = #tpu.dot_dimension_numbers<[1], [0], [0], [1], [0, 0, 1, 1], [], []>} : vector<128x128xbf16>, vector<128x1xbf16>, vector<128x1xf32> -> vector<128x1xf32>
    %7 = arith.addf %3, %6 : vector<128x1xf32>
    %c0_6 = arith.constant 0 : index
    %c0_7 = arith.constant 0 : index
    %8 = vector.load %arg7[%c0_6, %c0_7] : memref<128x1xf32, #tpu.memory_space<vmem>>, vector<128x1xf32>
    tpu.vector_store %arg7[%c0_6, %c0_7], %7 {strides = array<i32>} : memref<128x1xf32, #tpu.memory_space<vmem>>, vector<128x1xf32>,
    %c2_i32 = arith.constant 2 : i32
    %9 = arith.cmpi eq, %arg1, %c2_i32 : i32
    %10 = arith.extui %9 : i1 to i32
    %c0_i32_8 = arith.constant 0 : i32
    %11 = arith.cmpi ne, %10, %c0_i32_8 : i32
    scf.if %11 {
      %c0_9 = arith.constant 0 : index
      %c0_10 = arith.constant 0 : index
      %12 = vector.load %arg7[%c0_9, %c0_10] : memref<128x1xf32, #tpu.memory_space<vmem>>, vector<128x1xf32>
      %c0_11 = arith.constant 0 : index
      %c0_12 = arith.constant 0 : index
      %13 = vector.load %arg4[%c0_11, %c0_12] : memref<128x1xf32, #tpu.memory_space<vmem>>, vector<128x1xf32>
      %14 = arith.mulf %12, %13 : vector<128x1xf32>
      %c0_13 = arith.constant 0 : index
      %15 = memref.load %arg5[%c0_13] : memref<1xf32, #tpu.memory_space<smem>>
      %16 = vector.broadcast %15 : f32 to vector<128x1xf32>
      %17 = arith.addf %14, %16 : vector<128x1xf32>
      %cst_14 = arith.constant 0.000000e+00 : f32
      %18 = vector.broadcast %cst_14 : f32 to vector<128x1xf32>
      %19 = arith.maximumf %17, %18 : vector<128x1xf32>
      %c0_15 = arith.constant 0 : index
      %c0_16 = arith.constant 0 : index
      %20 = vector.load %arg6[%c0_15, %c0_16] : memref<128x1xf32, #tpu.memory_space<vmem>>, vector<128x1xf32>
      tpu.vector_store %arg6[%c0_15, %c0_16], %19 {strides = array<i32>} : memref<128x1xf32, #tpu.memory_space<vmem>>, vector<128x1xf32>,
    } else {
    }
    return
  }
  func.func @transform_0(%arg0: i32, %arg1: i32) -> (i32, i32) {
    %c0_i32 = arith.constant 0 : i32
    return %arg0, %arg1 : i32, i32
  }
  func.func @transform_1(%arg0: i32, %arg1: i32) -> (i32, i32) {
    %c0_i32 = arith.constant 0 : i32
    %c0_i32_0 = arith.constant 0 : i32
    return %arg1, %c0_i32 : i32, i32
  }
  func.func @transform_2(%arg0: i32, %arg1: i32) -> (i32, i32) {
    %c0_i32 = arith.constant 0 : i32
    %c0_i32_0 = arith.constant 0 : i32
    return %arg0, %c0_i32 : i32, i32
  }
  func.func @transform_3(%arg0: i32, %arg1: i32) -> i32 {
    %c0_i32 = arith.constant 0 : i32
    %c0_i32_0 = arith.constant 0 : i32
    return %c0_i32 : i32
  }
  func.func @transform_4(%arg0: i32, %arg1: i32) -> (i32, i32) {
    %c0_i32 = arith.constant 0 : i32
    %c0_i32_0 = arith.constant 0 : i32
    return %arg0, %c0_i32 : i32, i32
  }
}

</mosaic_0001>

<bundles_post_ra>
// kernel: one_layer_gcn_forward.1
= control target key start
LH: loop header
LB: loop body
LE: loop exit
PB: predicated region body
PF: predicated region fallthrough
CT: control target
= control target key end

     0   :  { %s1300_s0 = inlined_call_operand.vmem [shape: bf16[384,384], index: 0, kind: input, shape index: {}]   ;;  %s1301_s1 = inlined_call_operand.vmem [shape: bf16[384,1], index: 1, kind: input, shape index: {}]   ;;  %s1302_s2 = inlined_call_operand.vmem [shape: f32[384,1], index: 2, kind: input, shape index: {}]   ;;  %s1303_s3 = inlined_call_operand.<no memory space> [shape: f32[1], index: 3, kind: input, shape index: {}]   ;;  %s1304_s4 = inlined_call_operand.vmem [shape: f32[384,1], index: 4, kind: output, shape index: {}]  }
   0x1   :  { %9 = sst [smem:[#allocation3]] %s1303_s3 }
   0x2   :  { %s1081_s17 = smov 0   ;;  %s1083_s18 = smov 0  }
   0x3   :  { %s1085_s19 = smov 0   ;;  %s1087_s20 = smov 0  }
   0x4   :  { %s1089_s21 = smov 0   ;;  %s1091_s22 = smov 0  }
   0x5   :  { %s1093_s23 = smov 0  }
   0x6 LB: > { %s24_s3 = sadd.s32 1, %s1042_s21  ;;  %s27_s24 = sadd.s32 1, %s1046_s22  ;;  %s1050_s23 = sphi %s1093_s23, %s15_s23   ;;  %s1046_s22 = sphi %s1091_s22, %s1310_s22   ;;  %s1042_s21 = sphi %s1089_s21, %s1309_s21   ;;  %s1038_s20 = sphi %s1087_s20, %s1308_s20   ;;  %s1034_s19 = sphi %s1085_s19, %s1307_s19   ;;  %s1030_s18 = sphi %s1083_s18, %s1306_s18   ;;  %s1026_s17 = sphi %s1081_s17, %s1305_s17  }
   0x7   : > { %p25_p0 = scmp.ge.s32.totalorder %s24_s3, 3  ;;  %p43_p1 = scmp.ne.s32.totalorder %s1030_s18, %s1026_s17 }
   0x8   : > { %p44_p2 = scmp.eq.s32.totalorder %s1050_s23, 0  ;;  %s36_s28 = sadd.s32 1, %s1030_s18 }
   0x9   : > { %s1312_s3 = smov (%p25_p0, %s24_s3), 0  ;;  %s1314_s24 = smov (!%p25_p0, %s27_s24), %s1046_s22 }
   0xa   : > { %p45_p3 = por %p44_p2, %p43_p1  ;;  %p29_p4 = scmp.ge.s32.totalorder %s1314_s24, 3 }
   0xb   : > { %s32_s25 = ssub.s32 %s1042_s21, %s1312_s3  ;;  %p817_p6 = scmp.ge.s32.totalorder %s1050_s23, 9 }
   0xc   : > { %s1316_s24 = smov (%p29_p4, %s1314_s24), 0 }
   0xd   : > { %s31_s26 = ssub.s32 %s1046_s22, %s1316_s24  ;;  %171 = sbr.rel (%p817_p6) target bundleno = 41 (0x29), region = 20 }
   0xe   : > { %s33_s27 = sor.u32 %s32_s25, %s31_s26 }
   0xf   : > { %p34_p5 = scmp.eq.s32.totalorder %s33_s27, 0 }
  0x11   : > { %s1132_s29 = scalar_select %p34_p5, %s1030_s18, %s36_s28  }
  0x12   : > { %174 = sbr.rel (!%p45_p3) target bundleno = 41 (0x29), region = 24  ;;  %s176_s30 = sand.u32 (%p45_p3), 1, %s1030_s18  }
  0x13   : > { %s938_s5 = smul.u32 (%p45_p3), 48, %s1046_s22  ;;  %s818_s6 = sshll.u32 (%p45_p3), %s176_s30, 6 }
  0x14   : > { %s178_s12 = scalar_lea.vmem (%p45_p3), [#allocation4], %s818_s6 }
  0x15   : > { %s181_s7 = sadd.s32 (%p45_p3), %s1042_s21, %s938_s5 }
  0x16   : > { %s821_s8 = sshll.u32 (%p45_p3), %s181_s7, 2 }
  0x17   : > { %s1141_s11 = scalar_lea.vmem %s1300_s0, %s821_s8 }
  0x18   : > { %v200_v0 = vld [vmem:[%s1141_s11] sm:$0xf]  ;;  %v202_v1 = vld [vmem:[%s1141_s11 + $0xc] sm:$0xf]  ;;  %v204_v2 = vld [vmem:[%s1141_s11 + $0x18] sm:$0xf] }
  0x19   : > { %201 = vst [vmem:[%s178_s12] sm:$0xf] %v200_v0  ;;  %v206_v3 = vld [vmem:[%s1141_s11 + $0x24] sm:$0xf]  ;;  %v208_v4 = vld [vmem:[%s1141_s11 + $0x30] sm:$0xf] }
  0x1a   : > { %203 = vst [vmem:[%s178_s12 + $0x4] sm:$0xf] %v202_v1  ;;  %v210_v5 = vld [vmem:[%s1141_s11 + $0x3c] sm:$0xf]  ;;  %v212_v6 = vld [vmem:[%s1141_s11 + $0x48] sm:$0xf] }
  0x1b   : > { %205 = vst [vmem:[%s178_s12 + $0x8] sm:$0xf] %v204_v2  ;;  %v214_v7 = vld [vmem:[%s1141_s11 + $0x54] sm:$0xf]  ;;  %v216_v8 = vld [vmem:[%s1141_s11 + $0x60] sm:$0xf] }
  0x1c   : > { %207 = vst [vmem:[%s178_s12 + $0xc] sm:$0xf] %v206_v3  ;;  %v218_v9 = vld [vmem:[%s1141_s11 + $0x6c] sm:$0xf]  ;;  %v220_v10 = vld [vmem:[%s1141_s11 + $0x78] sm:$0xf] }
  0x1d   : > { %209 = vst [vmem:[%s178_s12 + $0x10] sm:$0xf] %v208_v4  ;;  %v222_v11 = vld [vmem:[%s1141_s11 + $0x84] sm:$0xf]  ;;  %v224_v12 = vld [vmem:[%s1141_s11 + $0x90] sm:$0xf] }
  0x1e   : > { %211 = vst [vmem:[%s178_s12 + $0x14] sm:$0xf] %v210_v5  ;;  %v226_v13 = vld [vmem:[%s1141_s11 + $0x9c] sm:$0xf]  ;;  %v228_v14 = vld [vmem:[%s1141_s11 + $0xa8] sm:$0xf] }
  0x1f   : > { %213 = vst [vmem:[%s178_s12 + $0x18] sm:$0xf] %v212_v6  ;;  %v230_v15 = vld [vmem:[%s1141_s11 + $0xb4] sm:$0xf] }
  0x20   : > { %215 = vst [vmem:[%s178_s12 + $0x1c] sm:$0xf] %v214_v7 }
  0x21   : > { %217 = vst [vmem:[%s178_s12 + $0x20] sm:$0xf] %v216_v8 }
  0x22   : > { %219 = vst [vmem:[%s178_s12 + $0x24] sm:$0xf] %v218_v9 }
  0x23   : > { %221 = vst [vmem:[%s178_s12 + $0x28] sm:$0xf] %v220_v10 }
  0x24   : > { %223 = vst [vmem:[%s178_s12 + $0x2c] sm:$0xf] %v222_v11 }
  0x25   : > { %225 = vst [vmem:[%s178_s12 + $0x30] sm:$0xf] %v224_v12 }
  0x26   : > { %227 = vst [vmem:[%s178_s12 + $0x34] sm:$0xf] %v226_v13 }
  0x27   : > { %229 = vst [vmem:[%s178_s12 + $0x38] sm:$0xf] %v228_v14 }
  0x28   : > { %231 = vst [vmem:[%s178_s12 + $0x3c] sm:$0xf] %v230_v15 }
  0x29 PF: > { %p822_p7 = scmp.ge.s32.totalorder %s1050_s23, 1  ;;  %p304_p8 = scmp.lt.s32.totalorder %s1050_s23, 10 }
  0x2b   : > { %p305_p9 = pnand %p822_p7, %p304_p8 }
  0x2c   : > { %s311_s13 = sand.u32 (!%p305_p9), 1, %s1026_s17   ;;  %s824_s14 = sshll.u32 (!%p305_p9), %s1034_s19, 4 }
  0x2d   : > { %308 = sbr.rel (%p305_p9) target bundleno = 293 (0x125), region = 73  ;;  %s823_s15 = sshll.u32 (!%p305_p9), %s311_s13, 6 }
  0x2e   : > { %p348_p10 = scmp.lt.s32.totalorder (!%p305_p9), %s824_s14, 47  ;;  %s826_s16 = sshll.u32 (!%p305_p9), %s1038_s20, 4 }
  0x2f   : > { %p354_p11 = scmp.lt.s32.totalorder (!%p305_p9), %s826_s16, 47  ;;  %s1179_s20 = scalar_lea.vmem (!%p305_p9), [#allocation4], %s823_s15 }
  0x30   : > { %p830_p12 = scmp.ne.s32.totalorder (!%p305_p9), %s1034_s19, 0 }
  0x32   : > { %s1318_s14 = smov (!%p348_p10, %s824_s14), 47  ;;  %s1320_s16 = smov (!%p354_p11, %s826_s16), 47 }
  0x33   : > { %s825_s25 = sshll.u32 %s1318_s14, 2  ;;  %s827_s30 = sshll.u32 %s1320_s16, 3 }
  0x34   : > { %s1167_s28 = scalar_lea.vmem %s1301_s1, %s825_s25  ;;  %s1172_s7 = scalar_lea.vmem %s1302_s2, %s827_s30 }
  0x35   : > { %s1177_s9 = scalar_lea.vmem %s1304_s4, %s827_s30  ;;  %368 = sbr.rel (%p830_p12) target bundleno = 75 (0x4b), region = 81 }
  0x3a   : > { %vm369_vm0 = vcmask 7168   ;;  %v1052_v16 = vmov 0.0  }
  0x3b   : > { %370 = vst.msk [vmem:[#allocation2] sm:$0xff] %vm369_vm0, %v1052_v16 }
  0x3c   : > { %371 = vst.msk [vmem:[#allocation2 + $0x8] sm:$0xff] %vm369_vm0, %v1052_v16 }
  0x3d   : > { %372 = vst.msk [vmem:[#allocation2 + $0x10] sm:$0xff] %vm369_vm0, %v1052_v16 }
  0x3e   : > { %373 = vst.msk [vmem:[#allocation2 + $0x18] sm:$0xff] %vm369_vm0, %v1052_v16 }
  0x3f   : > { %374 = vst.msk [vmem:[#allocation2 + $0x20] sm:$0xff] %vm369_vm0, %v1052_v16 }
  0x40   : > { %375 = vst.msk [vmem:[#allocation2 + $0x28] sm:$0xff] %vm369_vm0, %v1052_v16 }
  0x41   : > { %376 = vst.msk [vmem:[#allocation2 + $0x30] sm:$0xff] %vm369_vm0, %v1052_v16 }
  0x42   : > { %377 = vst.msk [vmem:[#allocation2 + $0x38] sm:$0xff] %vm369_vm0, %v1052_v16 }
  0x43   : > { %378 = vst.msk [vmem:[#allocation2 + $0x40] sm:$0xff] %vm369_vm0, %v1052_v16 }
  0x44   : > { %379 = vst.msk [vmem:[#allocation2 + $0x48] sm:$0xff] %vm369_vm0, %v1052_v16 }
  0x45   : > { %380 = vst.msk [vmem:[#allocation2 + $0x50] sm:$0xff] %vm369_vm0, %v1052_v16 }
  0x46   : > { %381 = vst.msk [vmem:[#allocation2 + $0x58] sm:$0xff] %vm369_vm0, %v1052_v16 }
  0x47   : > { %382 = vst.msk [vmem:[#allocation2 + $0x60] sm:$0xff] %vm369_vm0, %v1052_v16 }
  0x48   : > { %383 = vst.msk [vmem:[#allocation2 + $0x68] sm:$0xff] %vm369_vm0, %v1052_v16 }
  0x49   : > { %384 = vst.msk [vmem:[#allocation2 + $0x70] sm:$0xff] %vm369_vm0, %v1052_v16 }
  0x4a   : > { %385 = vst.msk [vmem:[#allocation2 + $0x78] sm:$0xff] %vm369_vm0, %v1052_v16 }
  0x4b PF: > { %v913_v17 = vld [vmem:[%s1167_s28 + $0x38] sm:$0xff]  ;;  %v912_v18 = vld [vmem:[%s1167_s28 + $0x30] sm:$0xff]  ;;  %v911_v19 = vld [vmem:[%s1167_s28 + $0x28] sm:$0xff]  ;;  %vm595_vm1 = vcmask 7168   ;;  %p895_p13 = scmp.ne.s32.totalorder %s1034_s19, 2 }
  0x4c   : > { %530 = vmatpush.bf16.msra.mxu0 %v913_v17  ;;  %914 = vmatpush.bf16.msra.mxu1 %v913_v17  ;;  %v910_v20 = vld [vmem:[%s1167_s28 + $0x20] sm:$0xff]  ;;  %v909_v21 = vld [vmem:[%s1167_s28 + $0x18] sm:$0xff]  ;;  %v908_v22 = vld [vmem:[%s1167_s28 + $0x10] sm:$0xff]  ;;  %s664_s10 = sld [smem:[#allocation3]] (!%p895_p13) }
  0x4d   : > { %915 = vmatpush.bf16.msra.mxu2 %v913_v17  ;;  %916 = vmatpush.bf16.msra.mxu3 %v913_v17  ;;  %v907_v23 = vld [vmem:[%s1167_s28 + $0x8] sm:$0xff]  ;;  %v906_v24 = vld [vmem:[%s1167_s28] sm:$0xff]  ;;  %v900_v26 = vld [vmem:[%s1179_s20 + $0x10] sm:$0xff] }
  0x4e   : > { %v898_v25 = vld [vmem:[%s1179_s20] sm:$0xff]  ;;  %v904_v28 = vld [vmem:[%s1179_s20 + $0x30] sm:$0xff]  ;;  %v899_v29 = vld [vmem:[%s1179_s20 + $0x8] sm:$0xff] }
  0x4f   : > { %v902_v27 = vld [vmem:[%s1179_s20 + $0x20] sm:$0xff]  ;;  %v901_v30 = vld [vmem:[%s1179_s20 + $0x18] sm:$0xff]  ;;  %v903_v31 = vld [vmem:[%s1179_s20 + $0x28] sm:$0xff] }
  0x50   : > { %531 = vmatpush.bf16.msra.mxu0 %v912_v18  ;;  %917 = vmatpush.bf16.msra.mxu1 %v912_v18  ;;  %v905_v32 = vld [vmem:[%s1179_s20 + $0x38] sm:$0xff]  ;;  %v386_v33 = vld [vmem:[#allocation2] sm:$0xff]  ;;  %v387_v41 = vld [vmem:[#allocation2 + $0x8] sm:$0xff] }
  0x51   : > { %918 = vmatpush.bf16.msra.mxu2 %v912_v18  ;;  %919 = vmatpush.bf16.msra.mxu3 %v912_v18  ;;  %v390_v34 = vld [vmem:[#allocation2 + $0x20] sm:$0xff]  ;;  %v391_v42 = vld [vmem:[#allocation2 + $0x28] sm:$0xff]  ;;  %v388_v53 = vld [vmem:[#allocation2 + $0x10] sm:$0xff] }
  0x52   : > { %v394_v39 = vld [vmem:[#allocation2 + $0x40] sm:$0xff]  ;;  %v395_v51 = vld [vmem:[#allocation2 + $0x48] sm:$0xff]  ;;  %v392_v54 = vld [vmem:[#allocation2 + $0x30] sm:$0xff] }
  0x53   : > { %v398_v40 = vld [vmem:[#allocation2 + $0x60] sm:$0xff]  ;;  %v399_v52 = vld [vmem:[#allocation2 + $0x68] sm:$0xff]  ;;  %v396_v63 = vld [vmem:[#allocation2 + $0x50] sm:$0xff] }
  0x54   : > { %532 = vmatpush.bf16.msra.mxu0 %v911_v19  ;;  %920 = vmatpush.bf16.msra.mxu1 %v911_v19  ;;  %v400_v0 = vld [vmem:[#allocation2 + $0x70] sm:$0xff]  ;;  %v389_v1 = vld [vmem:[#allocation2 + $0x18] sm:$0xff] }
  0x55   : > { %921 = vmatpush.bf16.msra.mxu2 %v911_v19  ;;  %922 = vmatpush.bf16.msra.mxu3 %v911_v19  ;;  %v393_v2 = vld [vmem:[#allocation2 + $0x38] sm:$0xff] }
  0x56   : > { %v397_v11 = vld [vmem:[#allocation2 + $0x58] sm:$0xff] }
  0x57   : > { %v401_v12 = vld [vmem:[#allocation2 + $0x78] sm:$0xff] }
  0x58   : > { %533 = vmatpush.bf16.msra.mxu0 %v910_v20  ;;  %923 = vmatpush.bf16.msra.mxu1 %v910_v20 }
  0x59   : > { %924 = vmatpush.bf16.msra.mxu2 %v910_v20  ;;  %925 = vmatpush.bf16.msra.mxu3 %v910_v20 }
  0x5c   : > { %534 = vmatpush.bf16.msra.mxu0 %v909_v21  ;;  %926 = vmatpush.bf16.msra.mxu1 %v909_v21 }
  0x5d   : > { %927 = vmatpush.bf16.msra.mxu2 %v909_v21  ;;  %928 = vmatpush.bf16.msra.mxu3 %v909_v21 }
  0x60   : > { %535 = vmatpush.bf16.msra.mxu0 %v908_v22  ;;  %929 = vmatpush.bf16.msra.mxu1 %v908_v22 }
  0x61   : > { %930 = vmatpush.bf16.msra.mxu2 %v908_v22  ;;  %931 = vmatpush.bf16.msra.mxu3 %v908_v22 }
  0x64   : > { %536 = vmatpush.bf16.msra.mxu0 %v907_v23  ;;  %932 = vmatpush.bf16.msra.mxu1 %v907_v23 }
  0x65   : > { %933 = vmatpush.bf16.msra.mxu2 %v907_v23  ;;  %934 = vmatpush.bf16.msra.mxu3 %v907_v23 }
  0x68   : > { %537 = vmatpush.bf16.msra.mxu0 %v906_v24  ;;  %935 = vmatpush.bf16.msra.mxu1 %v906_v24 }
  0x69   : > { %936 = vmatpush.bf16.msra.mxu2 %v906_v24  ;;  %937 = vmatpush.bf16.msra.mxu3 %v906_v24 }
  0x6b   : > { %538 = vmatmul.bf16.vlgmr.msra.gmra.mxu0 %v898_v25  ;;  %548 = vmatmul.bf16.vlgmr.msra.gmra.mxu1 %v900_v26 }
  0x6c   : > { %558 = vmatmul.bf16.vlgmr.msra.gmra.mxu2 %v902_v27  ;;  %568 = vmatmul.bf16.vlgmr.msra.gmra.mxu3 %v904_v28 }
  0x7b   : > { %543 = vmatmul.bf16.gmra.mxu0 %v899_v29  ;;  %553 = vmatmul.bf16.gmra.mxu1 %v901_v30 }
  0x7c   : > { %563 = vmatmul.bf16.gmra.mxu2 %v903_v31  ;;  %573 = vmatmul.bf16.gmra.mxu3 %v905_v32 }
  0xe8   : > { %v539_v35 = vpop.f32.mrf.mxu0  ;;  %v549_v36 = vpop.f32.mrf.mxu1 }
  0xe9   : > { %v579_v37 = vadd.f32 %v539_v35, %v386_v33  ;;  %v583_v38 = vadd.f32 %v549_v36, %v390_v34 }
  0xeb   : > { %596 = vst.msk [vmem:[#allocation2] sm:$0xff] %vm595_vm1, %v579_v37 }
  0xec   : > { %600 = vst.msk [vmem:[#allocation2 + $0x20] sm:$0xff] %vm595_vm1, %v583_v38 }
  0xef   : > { %v559_v43 = vpop.f32.mrf.mxu2  ;;  %v569_v44 = vpop.f32.mrf.mxu3 }
  0xf0   : > { %v587_v45 = vadd.f32 %v559_v43, %v394_v39  ;;  %v591_v46 = vadd.f32 %v569_v44, %v398_v40  ;;  %v541_v47 = vpop.f32.mrf.mxu0  ;;  %v551_v48 = vpop.f32.mrf.mxu1 }
  0xf1   : > { %v580_v49 = vadd.f32 %v541_v47, %v387_v41  ;;  %v584_v50 = vadd.f32 %v551_v48, %v391_v42 }
  0xf2   : > { %604 = vst.msk [vmem:[#allocation2 + $0x40] sm:$0xff] %vm595_vm1, %v587_v45 }
  0xf3   : > { %608 = vst.msk [vmem:[#allocation2 + $0x60] sm:$0xff] %vm595_vm1, %v591_v46 }
  0xf4   : > { %597 = vst.msk [vmem:[#allocation2 + $0x8] sm:$0xff] %vm595_vm1, %v580_v49 }
  0xf5   : > { %601 = vst.msk [vmem:[#allocation2 + $0x28] sm:$0xff] %vm595_vm1, %v584_v50 }
  0xf7   : > { %v561_v55 = vpop.f32.mrf.mxu2  ;;  %v571_v56 = vpop.f32.mrf.mxu3 }
  0xf8   : > { %v588_v57 = vadd.f32 %v561_v55, %v395_v51  ;;  %v592_v58 = vadd.f32 %v571_v56, %v399_v52  ;;  %v544_v59 = vpop.f32.mrf.mxu0  ;;  %v554_v60 = vpop.f32.mrf.mxu1 }
  0xf9   : > { %v581_v61 = vadd.f32 %v544_v59, %v388_v53  ;;  %v585_v62 = vadd.f32 %v554_v60, %v392_v54 }
  0xfa   : > { %605 = vst.msk [vmem:[#allocation2 + $0x48] sm:$0xff] %vm595_vm1, %v588_v57 }
  0xfb   : > { %609 = vst.msk [vmem:[#allocation2 + $0x68] sm:$0xff] %vm595_vm1, %v592_v58 }
  0xfc   : > { %598 = vst.msk [vmem:[#allocation2 + $0x10] sm:$0xff] %vm595_vm1, %v581_v61 }
  0xfd   : > { %602 = vst.msk [vmem:[#allocation2 + $0x30] sm:$0xff] %vm595_vm1, %v585_v62 }
  0xff   : > { %v564_v3 = vpop.f32.mrf.mxu2  ;;  %v574_v4 = vpop.f32.mrf.mxu3 }
 0x100   : > { %v589_v5 = vadd.f32 %v564_v3, %v396_v63  ;;  %v593_v6 = vadd.f32 %v574_v4, %v400_v0  ;;  %v546_v7 = vpop.f32.mrf.mxu0  ;;  %v556_v8 = vpop.f32.mrf.mxu1 }
 0x101   : > { %v582_v9 = vadd.f32 %v546_v7, %v389_v1  ;;  %v586_v10 = vadd.f32 %v556_v8, %v393_v2 }
 0x102   : > { %606 = vst.msk [vmem:[#allocation2 + $0x50] sm:$0xff] %vm595_vm1, %v589_v5 }
 0x103   : > { %610 = vst.msk [vmem:[#allocation2 + $0x70] sm:$0xff] %vm595_vm1, %v593_v6 }
 0x104   : > { %599 = vst.msk [vmem:[#allocation2 + $0x18] sm:$0xff] %vm595_vm1, %v582_v9 }
 0x105   : > { %603 = vst.msk [vmem:[#allocation2 + $0x38] sm:$0xff] %vm595_vm1, %v586_v10 }
 0x107   : > { %v566_v13 = vpop.f32.mrf.mxu2  ;;  %v576_v14 = vpop.f32.mrf.mxu3  ;;  %615 = sbr.rel (%p895_p13) target bundleno = 293 (0x125), region = 85 }
 0x108   : > { %v590_v15 = vadd.f32 %v566_v13, %v397_v11  ;;  %v594_v16 = vadd.f32 %v576_v14, %v401_v12 }
 0x10a   : > { %607 = vst.msk [vmem:[#allocation2 + $0x58] sm:$0xff] %vm595_vm1, %v590_v15 }
 0x10b   : > { %611 = vst.msk [vmem:[#allocation2 + $0x78] sm:$0xff] %vm595_vm1, %v594_v16 }
 0x10c   : > { %v616_v17 = vld [vmem:[#allocation2] sm:$0xff]  ;;  %v617_v19 = vld [vmem:[#allocation2 + $0x8] sm:$0xff]  ;;  %v618_v21 = vld [vmem:[#allocation2 + $0x10] sm:$0xff]  ;;  %v665_v42 = vstv %s664_s10 }
 0x10d   : > { %v632_v18 = vld [vmem:[%s1172_s7] sm:$0xff]  ;;  %v633_v20 = vld [vmem:[%s1172_s7 + $0x8] sm:$0xff]  ;;  %v634_v22 = vld [vmem:[%s1172_s7 + $0x10] sm:$0xff] }
 0x10e   : > { %v619_v23 = vld [vmem:[#allocation2 + $0x18] sm:$0xff]  ;;  %v620_v25 = vld [vmem:[#allocation2 + $0x20] sm:$0xff]  ;;  %v648_v26 = vmul.f32 %v632_v18, %v616_v17  ;;  %v649_v27 = vmul.f32 %v633_v20, %v617_v19  ;;  %v650_v28 = vmul.f32 %v634_v22, %v618_v21  ;;  %v621_v31 = vld [vmem:[#allocation2 + $0x28] sm:$0xff] }
 0x10f   : > { %v635_v24 = vld [vmem:[%s1172_s7 + $0x18] sm:$0xff]  ;;  %v636_v30 = vld [vmem:[%s1172_s7 + $0x20] sm:$0xff]  ;;  %v637_v32 = vld [vmem:[%s1172_s7 + $0x28] sm:$0xff] }
 0x110   : > { %v651_v29 = vmul.f32 %v635_v24, %v619_v23  ;;  %v652_v33 = vmul.f32 %v636_v30, %v620_v25  ;;  %v653_v34 = vmul.f32 %v637_v32, %v621_v31  ;;  %v622_v35 = vld [vmem:[#allocation2 + $0x30] sm:$0xff]  ;;  %v623_v37 = vld [vmem:[#allocation2 + $0x38] sm:$0xff]  ;;  %v624_v40 = vld [vmem:[#allocation2 + $0x40] sm:$0xff]  ;;  %v666_v46 = vadd.f32 %v665_v42, %v648_v26 }
 0x111   : > { %v638_v36 = vld [vmem:[%s1172_s7 + $0x30] sm:$0xff]  ;;  %v639_v39 = vld [vmem:[%s1172_s7 + $0x38] sm:$0xff]  ;;  %v640_v41 = vld [vmem:[%s1172_s7 + $0x40] sm:$0xff]  ;;  %v667_v47 = vadd.f32 %v665_v42, %v649_v27  ;;  %v668_v48 = vadd.f32 %v665_v42, %v650_v28 }
 0x112   : > { %v654_v38 = vmul.f32 %v638_v36, %v622_v35  ;;  %v655_v43 = vmul.f32 %v639_v39, %v623_v37  ;;  %v656_v44 = vmul.f32 %v640_v41, %v624_v40  ;;  %v625_v45 = vld [vmem:[#allocation2 + $0x48] sm:$0xff]  ;;  %v669_v49 = vadd.f32 %v665_v42, %v651_v29  ;;  %v626_v51 = vld [vmem:[#allocation2 + $0x50] sm:$0xff]  ;;  %v627_v55 = vld [vmem:[#allocation2 + $0x58] sm:$0xff] }
 0x113   : > { %v641_v50 = vld [vmem:[%s1172_s7 + $0x48] sm:$0xff]  ;;  %v642_v52 = vld [vmem:[%s1172_s7 + $0x50] sm:$0xff]  ;;  %v670_v53 = vadd.f32 %v665_v42, %v652_v33  ;;  %v671_v54 = vadd.f32 %v665_v42, %v653_v34  ;;  %v643_v56 = vld [vmem:[%s1172_s7 + $0x58] sm:$0xff]  ;;  %v682_v58 = vmax.f32 %v666_v46, 0.0  ;;  %v683_v59 = vmax.f32 %v667_v47, 0.0 }
 0x114   : > { %v628_v57 = vld [vmem:[#allocation2 + $0x60] sm:$0xff]  ;;  %v684_v60 = vmax.f32 %v668_v48, 0.0  ;;  %v672_v61 = vadd.f32 %v665_v42, %v654_v38  ;;  %v629_v63 = vld [vmem:[#allocation2 + $0x68] sm:$0xff]  ;;  %v685_v1 = vmax.f32 %v669_v49, 0.0  ;;  %v673_v3 = vadd.f32 %v665_v42, %v655_v43  ;;  %v630_v4 = vld [vmem:[#allocation2 + $0x70] sm:$0xff] }
 0x115   : > { %v644_v62 = vld [vmem:[%s1172_s7 + $0x60] sm:$0xff]  ;;  %v645_v0 = vld [vmem:[%s1172_s7 + $0x68] sm:$0xff]  ;;  %v686_v2 = vmax.f32 %v670_v53, 0.0  ;;  %v646_v5 = vld [vmem:[%s1172_s7 + $0x70] sm:$0xff]  ;;  %698 = vst.msk [vmem:[%s1177_s9] sm:$0xff] %vm595_vm1, %v682_v58  ;;  %v674_v6 = vadd.f32 %v665_v42, %v656_v44  ;;  %v657_v7 = vmul.f32 %v641_v50, %v625_v45  ;;  %v658_v8 = vmul.f32 %v642_v52, %v626_v51 }
 0x116   : > { %v659_v9 = vmul.f32 %v643_v56, %v627_v55  ;;  %v631_v10 = vld [vmem:[#allocation2 + $0x78] sm:$0xff]  ;;  %699 = vst.msk [vmem:[%s1177_s9 + $0x8] sm:$0xff] %vm595_vm1, %v683_v59  ;;  %v687_v12 = vmax.f32 %v671_v54, 0.0  ;;  %v660_v13 = vmul.f32 %v644_v62, %v628_v57  ;;  %v661_v14 = vmul.f32 %v645_v0, %v629_v63 }
 0x117   : > { %v647_v11 = vld [vmem:[%s1172_s7 + $0x78] sm:$0xff]  ;;  %700 = vst.msk [vmem:[%s1177_s9 + $0x10] sm:$0xff] %vm595_vm1, %v684_v60  ;;  %v688_v15 = vmax.f32 %v672_v61, 0.0  ;;  %v675_v16 = vadd.f32 %v665_v42, %v657_v7  ;;  %v676_v17 = vadd.f32 %v665_v42, %v658_v8  ;;  %v662_v18 = vmul.f32 %v646_v5, %v630_v4 }
 0x118   : > { %701 = vst.msk [vmem:[%s1177_s9 + $0x18] sm:$0xff] %vm595_vm1, %v685_v1  ;;  %v689_v19 = vmax.f32 %v673_v3, 0.0  ;;  %v677_v20 = vadd.f32 %v665_v42, %v659_v9  ;;  %v663_v21 = vmul.f32 %v647_v11, %v631_v10  ;;  %v690_v22 = vmax.f32 %v674_v6, 0.0 }
 0x119   : > { %702 = vst.msk [vmem:[%s1177_s9 + $0x20] sm:$0xff] %vm595_vm1, %v686_v2  ;;  %v678_v23 = vadd.f32 %v665_v42, %v660_v13  ;;  %v691_v24 = vmax.f32 %v675_v16, 0.0  ;;  %v679_v25 = vadd.f32 %v665_v42, %v661_v14  ;;  %v692_v26 = vmax.f32 %v676_v17, 0.0 }
 0x11a   : > { %703 = vst.msk [vmem:[%s1177_s9 + $0x28] sm:$0xff] %vm595_vm1, %v687_v12  ;;  %v680_v27 = vadd.f32 %v665_v42, %v662_v18  ;;  %v693_v28 = vmax.f32 %v677_v20, 0.0  ;;  %v681_v29 = vadd.f32 %v665_v42, %v663_v21 }
 0x11b   : > { %704 = vst.msk [vmem:[%s1177_s9 + $0x30] sm:$0xff] %vm595_vm1, %v688_v15  ;;  %v694_v30 = vmax.f32 %v678_v23, 0.0  ;;  %v695_v31 = vmax.f32 %v679_v25, 0.0 }
 0x11c   : > { %705 = vst.msk [vmem:[%s1177_s9 + $0x38] sm:$0xff] %vm595_vm1, %v689_v19  ;;  %v696_v32 = vmax.f32 %v680_v27, 0.0  ;;  %v697_v33 = vmax.f32 %v681_v29, 0.0 }
 0x11d   : > { %706 = vst.msk [vmem:[%s1177_s9 + $0x40] sm:$0xff] %vm595_vm1, %v690_v22 }
 0x11e   : > { %707 = vst.msk [vmem:[%s1177_s9 + $0x48] sm:$0xff] %vm595_vm1, %v691_v24 }
 0x11f   : > { %708 = vst.msk [vmem:[%s1177_s9 + $0x50] sm:$0xff] %vm595_vm1, %v692_v26 }
 0x120   : > { %709 = vst.msk [vmem:[%s1177_s9 + $0x58] sm:$0xff] %vm595_vm1, %v693_v28 }
 0x121   : > { %710 = vst.msk [vmem:[%s1177_s9 + $0x60] sm:$0xff] %vm595_vm1, %v694_v30 }
 0x122   : > { %711 = vst.msk [vmem:[%s1177_s9 + $0x68] sm:$0xff] %vm595_vm1, %v695_v31 }
 0x123   : > { %712 = vst.msk [vmem:[%s1177_s9 + $0x70] sm:$0xff] %vm595_vm1, %v696_v32 }
 0x124   : > { %713 = vst.msk [vmem:[%s1177_s9 + $0x78] sm:$0xff] %vm595_vm1, %v697_v33 }
 0x125 PF: > { %s15_s23 = sadd.s32 1, %s1050_s23   ;;  %s1305_s17 = smov %s1030_s18 }
 0x126   : > { %p12_p0 = scmp.ge.s32.totalorder %s15_s23, 11   ;;  %s1306_s18 = smov %s1132_s29 }
 0x127   : > { %s1307_s19 = smov %s1042_s21  ;;  %s1308_s20 = smov %s1046_s22 }
 0x128   : > { %s1309_s21 = smov %s1312_s3  ;;  %s1310_s22 = smov %s1316_s24 }
 0x129   :  { %14 = sbr.rel (!%p12_p0) target bundleno = 6 (0x6), region = 126 }

</bundles_post_ra>
